<compile_context>
chip_gen: v6e
topology: v6e:2x2x1
jax: 0.10.0
libtpu: 0.0.40
codegen_flags: <defaults>
</compile_context>

<pallas_src>
import functools

import jax
import jax.numpy as jnp
from jax.experimental import pallas as pl
from jax.experimental.pallas import tpu as pltpu

HIDDEN = 512            # fixed by the module definition
_LANE = 128             # TPU lane width; batch-tile granularity
_MIN_SPLIT_ROWS = 512   # per-core minimum rows worth a forced megacore split


def _round_up(x, m):
    return ((x + m - 1) // m) * m


# ---------------------------------------------------------------------------
# Trace-time hardware introspection (conservative fallbacks, never raises).
# ---------------------------------------------------------------------------
def _tpu_info():
    try:
        return pltpu.get_tpu_info()
    except Exception:
        return None


def _vmem_capacity_bytes():
    info = _tpu_info()
    if info is not None:
        try:
            v = int(getattr(info, "vmem_capacity_bytes", 0) or 0)
            if v > 0:
                return v
        except Exception:
            pass
    return 64 << 20  # v7x per-TensorCore VMEM (smallest of v5e/v6e/v7x)


def _tensorcores_per_chip():
    info = _tpu_info()
    if info is not None:
        for name in ("tensorcores_per_chip", "cores_per_chip",
                     "num_tensorcores", "num_cores", "core_count"):
            try:
                v = int(getattr(info, name, 0) or 0)
            except Exception:
                continue
            if 0 < v <= 2:       # per-chip TC count; ignore slice-wide counts
                return v
    return 1  # v5e / v6e: one TensorCore per chip


def _vmem_bytes_estimate(block_b, in_ch, latent, x_item, out_item, w_item,
                         c_item, weight_bufs):
    """Generous per-step VMEM estimate (blocks + in-kernel temporaries)."""
    est = 2 * block_b * in_ch * x_item                 # x tile, double-buffered
    est += 2 * block_b * latent * out_item             # out tile, double-buffered
    est += weight_bufs * (in_ch * HIDDEN + HIDDEN * latent) * w_item
    est += weight_bufs * (HIDDEN + latent) * 4         # biases (f32)
    est += block_b * in_ch * c_item                    # x cast copy
    est += block_b * HIDDEN * (4 + c_item)             # h (f32) + cast for 2nd dot
    est += block_b * latent * 4                        # y (f32) before store cast
    return est


# ---------------------------------------------------------------------------
# Kernel: two MXU matmuls + VPU ReLU, fully fused, f32 accumulation.
# ---------------------------------------------------------------------------
def _make_kernel(compute_dtype):
    def encoder_kernel(x_ref, w1_ref, b1_ref, w2_ref, b2_ref, o_ref):
        x = x_ref[...].astype(compute_dtype)
        w1 = w1_ref[...].astype(compute_dtype)
        h = jnp.dot(x, w1, preferred_element_type=jnp.float32) + b1_ref[...]
        h = jnp.maximum(h, 0.0)
        w2 = w2_ref[...].astype(compute_dtype)
        y = jnp.dot(h.astype(compute_dtype), w2,
                    preferred_element_type=jnp.float32) + b2_ref[...]
        o_ref[...] = y.astype(o_ref.dtype)
    return encoder_kernel


@functools.partial(jax.jit, static_argnames=("block_b", "compute_dtype"))
def encoder_forward(x, w1, b1, w2, b2, *, block_b=1024, compute_dtype=jnp.bfloat16):
    """Fused Encoder forward.  x: [B, in_channels] -> [B, latent_dim]."""
    B, in_channels = x.shape
    latent_dim = w2.shape[1]
    out_dtype = x.dtype

    b1 = b1.astype(jnp.float32).reshape(1, HIDDEN)
    b2 = b2.astype(jnp.float32).reshape(1, latent_dim)

    x_item = jnp.dtype(x.dtype).itemsize
    w_item = jnp.dtype(w1.dtype).itemsize
    c_item = jnp.dtype(compute_dtype).itemsize
    out_item = jnp.dtype(out_dtype).itemsize

    # Grid-resident weights (constant index_map). Single-buffer them only when
    # large, so the redundant second buffer doesn't eat batch-tile headroom.
    weight_bytes = (in_channels * HIDDEN + HIDDEN * latent_dim) * w_item
    single_buffer_weights = weight_bytes > (4 << 20)
    weight_bufs = 1 if single_buffer_weights else 2
    w_mode = {"pipeline_mode": pl.Buffered(1)} if single_buffer_weights else {}

    # --- Batch-tile selection against a per-generation VMEM budget ----------
    vmem_phys = _vmem_capacity_bytes()
    tile_budget = (vmem_phys * 5) // 8
    bm = min(block_b, max(_LANE, _round_up(B, _LANE)))
    bm = _round_up(bm, _LANE)
    while bm > _LANE and _vmem_bytes_estimate(
            bm, in_channels, latent_dim, x_item, out_item, w_item, c_item,
            weight_bufs) > tile_budget:
        bm = max(_LANE, _round_up(bm // 2, _LANE))

    num_blocks = pl.cdiv(B, bm)

    # v7x megacore only: split a lone full tile across the two TensorCores.
    if _tensorcores_per_chip() >= 2 and num_blocks == 1 and B >= 2 * _MIN_SPLIT_ROWS:
        num_blocks = 2
        bm = max(_LANE, _round_up(pl.cdiv(B, 2), _LANE))

    est = _vmem_bytes_estimate(bm, in_channels, latent_dim, x_item, out_item,
                               w_item, c_item, weight_bufs)
    vmem_limit = int(min(max((est * 3) // 2 + (4 << 20), 32 << 20),
                         (vmem_phys * 3) // 4))

    flops = 2 * B * (in_channels * HIDDEN + HIDDEN * latent_dim)
    bytes_accessed = (B * in_channels * x_item + weight_bytes
                      + (HIDDEN + latent_dim) * 4 + B * latent_dim * out_item)

    out = pl.pallas_call(
        _make_kernel(compute_dtype),
        out_shape=jax.ShapeDtypeStruct((B, latent_dim), out_dtype),
        grid_spec=pltpu.PrefetchScalarGridSpec(
            num_scalar_prefetch=0,
            grid=(num_blocks,),
            in_specs=[
                pl.BlockSpec((bm, in_channels), lambda i: (i, 0)),            # x tile
                pl.BlockSpec((in_channels, HIDDEN), lambda i: (0, 0), **w_mode),   # W1
                pl.BlockSpec((1, HIDDEN), lambda i: (0, 0), **w_mode),             # b1
                pl.BlockSpec((HIDDEN, latent_dim), lambda i: (0, 0), **w_mode),    # W2
                pl.BlockSpec((1, latent_dim), lambda i: (0, 0), **w_mode),         # b2
            ],
            out_specs=pl.BlockSpec((bm, latent_dim), lambda i: (i, 0)),
        ),
        compiler_params=pltpu.CompilerParams(
            dimension_semantics=("parallel",),
            vmem_limit_bytes=vmem_limit,
        ),
        cost_estimate=pl.CostEstimate(flops=flops, transcendentals=0,
                                      bytes_accessed=int(bytes_accessed)),
    )(x, w1, b1, w2, b2)
    return out


# ---------------------------------------------------------------------------
# Params / reference
# ---------------------------------------------------------------------------
def init_params(key, in_channels, latent_dim, dtype=jnp.float32):
    # Mimics nn.Linear's uniform(-1/sqrt(fan_in), 1/sqrt(fan_in)) init.
    k1, k2, k3, k4 = jax.random.split(key, 4)
    lim1 = 1.0 / jnp.sqrt(in_channels)
    lim2 = 1.0 / jnp.sqrt(HIDDEN)
    w1 = jax.random.uniform(k1, (in_channels, HIDDEN), dtype, -lim1, lim1)
    b1 = jax.random.uniform(k2, (1, HIDDEN), dtype, -lim1, lim1)
    w2 = jax.random.uniform(k3, (HIDDEN, latent_dim), dtype, -lim2, lim2)
    b2 = jax.random.uniform(k4, (1, latent_dim), dtype, -lim2, lim2)
    return w1, b1, w2, b2


def encoder_reference(x, w1, b1, w2, b2):
    h = jnp.maximum(x @ w1 + b1, 0.0)
    return h @ w2 + b2


if __name__ == "__main__":
    key = jax.random.PRNGKey(0)
    kx, kx2, kp = jax.random.split(key, 3)

    in_channels, latent_dim = 32, 16
    w1, b1, w2, b2 = init_params(kp, in_channels, latent_dim)

    # Case 1: default path (bf16 MXU feeds, f32 accumulation), small batch.
    B = 8
    x = jax.random.normal(kx, (B, in_channels), jnp.float32)
    ref = encoder_reference(x, w1, b1, w2, b2)
    out = jax.block_until_ready(encoder_forward(x, w1, b1, w2, b2))
    assert out.shape == (B, latent_dim), out.shape
    assert jnp.allclose(out, ref, atol=5e-2, rtol=5e-2), "bf16 mismatch vs reference"

    # Case 2: f32 compute path (tight tolerance).
    out_f32 = jax.block_until_ready(
        encoder_forward(x, w1, b1, w2, b2, compute_dtype=jnp.float32))
    assert out_f32.shape == (B, latent_dim), out_f32.shape
    assert jnp.allclose(out_f32, ref, atol=1e-4, rtol=1e-4), "f32 mismatch vs reference"

    # Case 3: ragged batch (not a multiple of 8) exercises the partial-block path
    # (no wrapper-side pad, no post-slice).
    B2 = 21
    x2 = jax.random.normal(kx2, (B2, in_channels), jnp.float32)
    ref2 = encoder_reference(x2, w1, b1, w2, b2)
    out2 = jax.block_until_ready(
        encoder_forward(x2, w1, b1, w2, b2, compute_dtype=jnp.float32))
    assert out2.shape == (B2, latent_dim), out2.shape
    assert jnp.allclose(out2, ref2, atol=1e-4, rtol=1e-4), "ragged mismatch vs reference"

    print("KERNEL_OK")
</pallas_src>

<mosaic_0001>
module attributes {stable_mosaic.version = 11 : i64} {
  func.func @encoder_kernel(%arg0: i32, %arg1: memref<128x32xf32, #tpu.memory_space<vmem>>, %arg2: memref<32x512xf32, #tpu.memory_space<vmem>>, %arg3: memref<1x512xf32, #tpu.memory_space<vmem>>, %arg4: memref<512x16xf32, #tpu.memory_space<vmem>>, %arg5: memref<1x16xf32, #tpu.memory_space<vmem>>, %arg6: memref<128x16xf32, #tpu.memory_space<vmem>>) attributes {dimension_semantics = [#tpu.dimension_semantics<parallel>], iteration_bounds = array<i64: 1>, scalar_prefetch = 0 : i64, scratch_operands = 0 : i64, tpu.core_type = #tpu.core_type<tc>, window_params = [{transform_indices = @transform_0, window_bounds = array<i64: 128, 32>}, {pipeline_mode = #tpu.pipeline_mode<synchronous>, transform_indices = @transform_1, window_bounds = array<i64: 32, 512>}, {pipeline_mode = #tpu.pipeline_mode<synchronous>, transform_indices = @transform_2, window_bounds = array<i64: 1, 512>}, {pipeline_mode = #tpu.pipeline_mode<synchronous>, transform_indices = @transform_3, window_bounds = array<i64: 512, 16>}, {pipeline_mode = #tpu.pipeline_mode<synchronous>, transform_indices = @transform_4, window_bounds = array<i64: 1, 16>}, {transform_indices = @transform_5, window_bounds = array<i64: 128, 16>}]} {
    %c0 = arith.constant 0 : index
    %c0_0 = arith.constant 0 : index
    %0 = vector.load %arg1[%c0, %c0_0] : memref<128x32xf32, #tpu.memory_space<vmem>>, vector<128x32xf32>
    %1 = arith.truncf %0 : vector<128x32xf32> to vector<128x32xbf16>
    %c0_1 = arith.constant 0 : index
    %c0_2 = arith.constant 0 : index
    %2 = vector.load %arg2[%c0_1, %c0_2] : memref<32x512xf32, #tpu.memory_space<vmem>>, vector<32x512xf32>
    %3 = arith.truncf %2 : vector<32x512xf32> to vector<32x512xbf16>
    %cst = arith.constant dense<0.000000e+00> : vector<128x512xf32>
    %4 = tpu.matmul %1, %3, %cst {dimension_numbers = #tpu.dot_dimension_numbers<[1], [0], [0], [1], [0, 0, 1, 1], [], []>} : vector<128x32xbf16>, vector<32x512xbf16>, vector<128x512xf32> -> vector<128x512xf32>
    %c0_3 = arith.constant 0 : index
    %c0_4 = arith.constant 0 : index
    %5 = vector.load %arg3[%c0_3, %c0_4] : memref<1x512xf32, #tpu.memory_space<vmem>>, vector<1x512xf32>
    %6 = vector.broadcast %5 : vector<1x512xf32> to vector<128x512xf32>
    %7 = arith.addf %4, %6 : vector<128x512xf32>
    %cst_5 = arith.constant 0.000000e+00 : f32
    %8 = vector.broadcast %cst_5 : f32 to vector<128x512xf32>
    %9 = arith.maximumf %7, %8 : vector<128x512xf32>
    %c0_6 = arith.constant 0 : index
    %c0_7 = arith.constant 0 : index
    %10 = vector.load %arg4[%c0_6, %c0_7] : memref<512x16xf32, #tpu.memory_space<vmem>>, vector<512x16xf32>
    %11 = arith.truncf %10 : vector<512x16xf32> to vector<512x16xbf16>
    %12 = arith.truncf %9 : vector<128x512xf32> to vector<128x512xbf16>
    %cst_8 = arith.constant dense<0.000000e+00> : vector<128x16xf32>
    %13 = tpu.matmul %12, %11, %cst_8 {dimension_numbers = #tpu.dot_dimension_numbers<[1], [0], [0], [1], [0, 0, 1, 1], [], []>} : vector<128x512xbf16>, vector<512x16xbf16>, vector<128x16xf32> -> vector<128x16xf32>
    %c0_9 = arith.constant 0 : index
    %c0_10 = arith.constant 0 : index
    %14 = vector.load %arg5[%c0_9, %c0_10] : memref<1x16xf32, #tpu.memory_space<vmem>>, vector<1x16xf32>
    %15 = vector.broadcast %14 : vector<1x16xf32> to vector<128x16xf32>
    %16 = arith.addf %13, %15 : vector<128x16xf32>
    %c0_11 = arith.constant 0 : index
    %c0_12 = arith.constant 0 : index
    %17 = vector.load %arg6[%c0_11, %c0_12] : memref<128x16xf32, #tpu.memory_space<vmem>>, vector<128x16xf32>
    tpu.vector_store %arg6[%c0_11, %c0_12], %16 {strides = array<i32>} : memref<128x16xf32, #tpu.memory_space<vmem>>, vector<128x16xf32>,
    return
  }
  func.func @transform_0(%arg0: i32) -> (i32, i32) {
    %c0_i32 = arith.constant 0 : i32
    %c0_i32_0 = arith.constant 0 : i32
    return %arg0, %c0_i32 : i32, i32
  }
  func.func @transform_1(%arg0: i32) -> (i32, i32) {
    %c0_i32 = arith.constant 0 : i32
    %c0_i32_0 = arith.constant 0 : i32
    %c0_i32_1 = arith.constant 0 : i32
    return %c0_i32, %c0_i32_0 : i32, i32
  }
  func.func @transform_2(%arg0: i32) -> (i32, i32) {
    %c0_i32 = arith.constant 0 : i32
    %c0_i32_0 = arith.constant 0 : i32
    %c0_i32_1 = arith.constant 0 : i32
    return %c0_i32, %c0_i32_0 : i32, i32
  }
  func.func @transform_3(%arg0: i32) -> (i32, i32) {
    %c0_i32 = arith.constant 0 : i32
    %c0_i32_0 = arith.constant 0 : i32
    %c0_i32_1 = arith.constant 0 : i32
    return %c0_i32, %c0_i32_0 : i32, i32
  }
  func.func @transform_4(%arg0: i32) -> (i32, i32) {
    %c0_i32 = arith.constant 0 : i32
    %c0_i32_0 = arith.constant 0 : i32
    %c0_i32_1 = arith.constant 0 : i32
    return %c0_i32, %c0_i32_0 : i32, i32
  }
  func.func @transform_5(%arg0: i32) -> (i32, i32) {
    %c0_i32 = arith.constant 0 : i32
    %c0_i32_0 = arith.constant 0 : i32
    return %arg0, %c0_i32 : i32, i32
  }
}

</mosaic_0001>

<bundles_post_ra>
// kernel: encoder_forward.1
= control target key start
LH: loop header
LB: loop body
LE: loop exit
PB: predicated region body
PF: predicated region fallthrough
CT: control target
= control target key end

     0   :  { %10 = vsyncpa [#allocation3], 0  ;;  %v940_v6 = vmov 0   ;;  %vm92_vm0 = vcmask 261120   ;;  %vm736_vm1 = vcmask 130048   ;;  %s1409_s0 = inlined_call_operand.vmem [shape: f32[8,32], index: 0, kind: input, shape index: {}]   ;;  %s1410_s1 = inlined_call_operand.vmem [shape: f32[32,512], index: 1, kind: input, shape index: {}]   ;;  %s1411_s2 = inlined_call_operand.vmem [shape: f32[1,512], index: 2, kind: input, shape index: {}]   ;;  %s1412_s3 = inlined_call_operand.vmem [shape: f32[512,16], index: 3, kind: input, shape index: {}]   ;;  %s1413_s4 = inlined_call_operand.vmem [shape: f32[1,16], index: 4, kind: input, shape index: {}]   ;;  %s1414_s5 = inlined_call_operand.hbm [shape: f32[8,16], index: 5, kind: output, shape index: {}]  }
   0x1   :  { %v55_v0 = vld [vmem:[%s1410_s1 + $0x48] sm:$0xff]  ;;  %v57_v3 = vld [vmem:[%s1410_s1 + $0x58] sm:$0xff]  ;;  %v54_v5 = vld [vmem:[%s1410_s1 + $0x40] sm:$0xff]  ;;  %149 = vmatprep.mubr.bf16.mxu0 %v940_v6  ;;  %262 = vmatprep.mubr.bf16.mxu1 %v940_v6 }
   0x2   :  { %v59_v1 = vld [vmem:[%s1410_s1 + $0x68] sm:$0xff]  ;;  %v61_v4 = vld [vmem:[%s1410_s1 + $0x78] sm:$0xff]  ;;  %v58_v8 = vld [vmem:[%s1410_s1 + $0x60] sm:$0xff] }
   0x3   :  { %v67_v2 = vpack.c.bf16 %v59_v1, %v55_v0  ;;  %v69_v7 = vpack.c.bf16 %v61_v4, %v57_v3  ;;  %v56_v9 = vld [vmem:[%s1410_s1 + $0x50] sm:$0xff]  ;;  %v66_v11 = vpack.c.bf16 %v58_v8, %v54_v5  ;;  %v47_v13 = vld [vmem:[%s1410_s1 + $0x8] sm:$0xff]  ;;  %v49_v15 = vld [vmem:[%s1410_s1 + $0x18] sm:$0xff] }
   0x4   :  { %v60_v10 = vld [vmem:[%s1410_s1 + $0x70] sm:$0xff]  ;;  %v51_v14 = vld [vmem:[%s1410_s1 + $0x28] sm:$0xff]  ;;  %v53_v17 = vld [vmem:[%s1410_s1 + $0x38] sm:$0xff] }
   0x5   :  { %129 = vmatprep.subr.bf16.mxu0 %v67_v2  ;;  %v68_v12 = vpack.c.bf16 %v60_v10, %v56_v9  ;;  %242 = vmatprep.subr.bf16.mxu1 %v69_v7  ;;  %v63_v16 = vpack.c.bf16 %v51_v14, %v47_v13  ;;  %v46_v18 = vld [vmem:[%s1410_s1] sm:$0xff]  ;;  %v65_v20 = vpack.c.bf16 %v53_v17, %v49_v15  ;;  %v48_v22 = vld [vmem:[%s1410_s1 + $0x10] sm:$0xff]  ;;  %v23_v26 = vld [vmem:[%s1409_s0 + $0x8] sm:$0xff] }
   0x6   :  { %v50_v19 = vld [vmem:[%s1410_s1 + $0x20] sm:$0xff]  ;;  %130 = vmatpush1.bf16.msra.mxu0 %v66_v11  ;;  %v52_v23 = vld [vmem:[%s1410_s1 + $0x30] sm:$0xff]  ;;  %v25_v29 = vld [vmem:[%s1409_s0 + $0x18] sm:$0xff] }
   0x7   :  { %243 = vmatpush1.bf16.msra.mxu1 %v68_v12  ;;  %v62_v21 = vpack.c.bf16 %v50_v19, %v46_v18  ;;  %v22_v24 = vld [vmem:[%s1409_s0] sm:$0xff]  ;;  %131 = vmatprep.subr.bf16.mxu0 %v63_v16  ;;  %v64_v25 = vpack.c.bf16 %v52_v23, %v48_v22  ;;  %v24_v28 = vld [vmem:[%s1409_s0 + $0x10] sm:$0xff]  ;;  %v438_v31 = vld [vmem:[%s1412_s3 + $0xf8] sm:$0xff] }
   0x8   :  { %244 = vmatprep.subr.bf16.mxu1 %v65_v20  ;;  %v38_v27 = vpack.c.bf16 %v23_v26, %v22_v24  ;;  %v437_v30 = vld [vmem:[%s1412_s3 + $0xf0] sm:$0xff]  ;;  %v422_v34 = vld [vmem:[%s1412_s3 + $0x78] sm:$0xff]  ;;  %v435_v41 = vld [vmem:[%s1412_s3 + $0xe0] sm:$0xff]  ;;  %v39_v51 = vpack.c.bf16 %v25_v29, %v24_v28 }
   0x9   :  { %v421_v32 = vld [vmem:[%s1412_s3 + $0x70] sm:$0xff]  ;;  %v486_v33 = vpack.c.bf16 %v438_v31, %v437_v30  ;;  %v470_v36 = vld [vmem:[%s1412_s3 + $0x1f8] sm:$0xff]  ;;  %v436_v43 = vld [vmem:[%s1412_s3 + $0xe8] sm:$0xff] }
   0xa   :  { %132 = vmatpush1.bf16.msra.mxu0 %v62_v21  ;;  %v469_v35 = vld [vmem:[%s1412_s3 + $0x1f0] sm:$0xff]  ;;  %v478_v37 = vpack.c.bf16 %v422_v34, %v421_v32  ;;  %v454_v40 = vld [vmem:[%s1412_s3 + $0x178] sm:$0xff]  ;;  %v419_v44 = vld [vmem:[%s1412_s3 + $0x60] sm:$0xff]  ;;  %v485_v46 = vpack.c.bf16 %v436_v43, %v435_v41 }
   0xb   :  { %245 = vmatpush1.bf16.msra.mxu1 %v64_v25  ;;  %v502_v38 = vpack.c.bf16 %v470_v36, %v469_v35  ;;  %v453_v39 = vld [vmem:[%s1412_s3 + $0x170] sm:$0xff]  ;;  %786 = vmatprep.subr.bf16.mxu0 %v486_v33  ;;  %v420_v45 = vld [vmem:[%s1412_s3 + $0x68] sm:$0xff]  ;;  %v467_v48 = vld [vmem:[%s1412_s3 + $0x1e0] sm:$0xff] }
   0xc   :  { %v494_v42 = vpack.c.bf16 %v454_v40, %v453_v39  ;;  %v477_v47 = vpack.c.bf16 %v420_v45, %v419_v44  ;;  %v468_v49 = vld [vmem:[%s1412_s3 + $0x1e8] sm:$0xff]  ;;  %v451_v50 = vld [vmem:[%s1412_s3 + $0x160] sm:$0xff]  ;;  %v433_v54 = vld [vmem:[%s1412_s3 + $0xd0] sm:$0xff] }
   0xd   :  { %769 = vmatmul.mubr.msk.bf16.vlgmr.msra.gmra.mxu0 %vm92_vm0, %v38_v27  ;;  %850 = vmatprep.subr.bf16.mxu1 %v502_v38  ;;  %v501_v52 = vpack.c.bf16 %v468_v49, %v467_v48  ;;  %v452_v53 = vld [vmem:[%s1412_s3 + $0x168] sm:$0xff]  ;;  %v434_v55 = vld [vmem:[%s1412_s3 + $0xd8] sm:$0xff]  ;;  %v417_v56 = vld [vmem:[%s1412_s3 + $0x50] sm:$0xff] }
   0xe   :  { %777 = vmatmul.mubr.msk.bf16.vlgmr.msra.gmra.mxu1 %vm92_vm0, %v38_v27  ;;  %159 = vmatprep.mubr.bf16.mxu0 %v940_v6  ;;  %v418_v57 = vld [vmem:[%s1412_s3 + $0x58] sm:$0xff]  ;;  %v465_v58 = vld [vmem:[%s1412_s3 + $0x1d0] sm:$0xff]  ;;  %v493_v59 = vpack.c.bf16 %v452_v53, %v451_v50  ;;  %v484_v60 = vpack.c.bf16 %v434_v55, %v433_v54  ;;  %v431_v2 = vld [vmem:[%s1412_s3 + $0xc0] sm:$0xff] }
   0xf   :  { %272 = vmatprep.mubr.bf16.mxu1 %v940_v6  ;;  %787 = vmatpush3.bf16.msra.mxu0 %v478_v37  ;;  %v466_v61 = vld [vmem:[%s1412_s3 + $0x1d8] sm:$0xff]  ;;  %v449_v62 = vld [vmem:[%s1412_s3 + $0x150] sm:$0xff]  ;;  %v476_v0 = vpack.c.bf16 %v418_v57, %v417_v56  ;;  %v432_v3 = vld [vmem:[%s1412_s3 + $0xc8] sm:$0xff] }
  0x10   :  { %851 = vmatpush3.bf16.msra.mxu1 %v494_v42  ;;  %788 = vmatprep.subr.bf16.mxu0 %v485_v46  ;;  %v450_v63 = vld [vmem:[%s1412_s3 + $0x158] sm:$0xff]  ;;  %v500_v1 = vpack.c.bf16 %v466_v61, %v465_v58  ;;  %v415_v4 = vld [vmem:[%s1412_s3 + $0x40] sm:$0xff]  ;;  %v483_v5 = vpack.c.bf16 %v432_v3, %v431_v2  ;;  %v416_v7 = vld [vmem:[%s1412_s3 + $0x48] sm:$0xff] }
  0x11   :  { %852 = vmatprep.subr.bf16.mxu1 %v501_v52  ;;  %v463_v8 = vld [vmem:[%s1412_s3 + $0x1c0] sm:$0xff]  ;;  %v464_v9 = vld [vmem:[%s1412_s3 + $0x1c8] sm:$0xff]  ;;  %v492_v12 = vpack.c.bf16 %v450_v63, %v449_v62  ;;  %v475_v15 = vpack.c.bf16 %v416_v7, %v415_v4  ;;  %v429_v17 = vld [vmem:[%s1412_s3 + $0xb0] sm:$0xff] }
  0x12   :  { %v26_v10 = vld [vmem:[%s1409_s0 + $0x20] sm:$0xff]  ;;  %v27_v11 = vld [vmem:[%s1409_s0 + $0x28] sm:$0xff]  ;;  %v499_v16 = vpack.c.bf16 %v464_v9, %v463_v8  ;;  %v430_v18 = vld [vmem:[%s1412_s3 + $0xb8] sm:$0xff] }
  0x13   :  { %789 = vmatpush3.bf16.msra.mxu0 %v477_v47  ;;  %v447_v13 = vld [vmem:[%s1412_s3 + $0x140] sm:$0xff]  ;;  %v448_v14 = vld [vmem:[%s1412_s3 + $0x148] sm:$0xff]  ;;  %v413_v19 = vld [vmem:[%s1412_s3 + $0x30] sm:$0xff]  ;;  %v40_v20 = vpack.c.bf16 %v27_v11, %v26_v10  ;;  %v482_v27 = vpack.c.bf16 %v430_v18, %v429_v17  ;;  %v72_v18 = vlaneseq }
  0x14   :  { %853 = vmatpush3.bf16.msra.mxu1 %v493_v59  ;;  %790 = vmatprep.subr.bf16.mxu0 %v484_v60  ;;  %v414_v21 = vld [vmem:[%s1412_s3 + $0x38] sm:$0xff]  ;;  %v461_v22 = vld [vmem:[%s1412_s3 + $0x1b0] sm:$0xff]  ;;  %v427_v24 = vld [vmem:[%s1412_s3 + $0xa0] sm:$0xff]  ;;  %v491_v26 = vpack.c.bf16 %v448_v14, %v447_v13 }
  0x15   :  { %770 = vmatmul.mubr.msk.bf16.gmra.mxu0 %vm92_vm0, %v39_v51  ;;  %854 = vmatprep.subr.bf16.mxu1 %v500_v1  ;;  %v462_v23 = vld [vmem:[%s1412_s3 + $0x1b8] sm:$0xff]  ;;  %v428_v25 = vld [vmem:[%s1412_s3 + $0xa8] sm:$0xff]  ;;  %v474_v28 = vpack.c.bf16 %v414_v21, %v413_v19  ;;  %v445_v30 = vld [vmem:[%s1412_s3 + $0x130] sm:$0xff]  ;;  %v73_v19 = vshrl.u32 %v72_v18, 7 }
  0x16   :  { %778 = vmatmul.mubr.msk.bf16.gmra.mxu1 %vm92_vm0, %v39_v51  ;;  %169 = vmatprep.mubr.bf16.mxu0 %v940_v6  ;;  %v498_v29 = vpack.c.bf16 %v462_v23, %v461_v22  ;;  %v446_v31 = vld [vmem:[%s1412_s3 + $0x138] sm:$0xff]  ;;  %v411_v32 = vld [vmem:[%s1412_s3 + $0x20] sm:$0xff]  ;;  %v481_v33 = vpack.c.bf16 %v428_v25, %v427_v24  ;;  %v412_v34 = vld [vmem:[%s1412_s3 + $0x28] sm:$0xff] }
  0x17   :  { %282 = vmatprep.mubr.bf16.mxu1 %v940_v6  ;;  %791 = vmatpush3.bf16.msra.mxu0 %v476_v0  ;;  %v459_v35 = vld [vmem:[%s1412_s3 + $0x1a0] sm:$0xff]  ;;  %v460_v36 = vld [vmem:[%s1412_s3 + $0x1a8] sm:$0xff]  ;;  %v28_v37 = vld [vmem:[%s1409_s0 + $0x30] sm:$0xff]  ;;  %v490_v39 = vpack.c.bf16 %v446_v31, %v445_v30  ;;  %v473_v42 = vpack.c.bf16 %v412_v34, %v411_v32  ;;  %v86_v21 = vsub.s32 3, %v73_v19  ;;  %v74_v22 = vsub.s32 0, %v73_v19 }
  0x18   :  { %792 = vmatprep.subr.bf16.mxu0 %v483_v5  ;;  %855 = vmatpush3.bf16.msra.mxu1 %v492_v12  ;;  %v29_v38 = vld [vmem:[%s1409_s0 + $0x38] sm:$0xff]  ;;  %v443_v40 = vld [vmem:[%s1412_s3 + $0x120] sm:$0xff]  ;;  %v444_v41 = vld [vmem:[%s1412_s3 + $0x128] sm:$0xff]  ;;  %v497_v43 = vpack.c.bf16 %v460_v36, %v459_v35  ;;  %v82_v23 = vsub.s32 2, %v73_v19 }
  0x19   :  { %856 = vmatprep.subr.bf16.mxu1 %v499_v16  ;;  %v425_v44 = vld [vmem:[%s1412_s3 + $0x90] sm:$0xff]  ;;  %v426_v45 = vld [vmem:[%s1412_s3 + $0x98] sm:$0xff]  ;;  %v41_v47 = vpack.c.bf16 %v29_v38, %v28_v37  ;;  %v489_v51 = vpack.c.bf16 %v444_v41, %v443_v40  ;;  %v30_v55 = vld [vmem:[%s1409_s0 + $0x40] sm:$0xff] }
  0x1a   :  { %v409_v46 = vld [vmem:[%s1412_s3 + $0x10] sm:$0xff]  ;;  %v410_v48 = vld [vmem:[%s1412_s3 + $0x18] sm:$0xff]  ;;  %v480_v52 = vpack.c.bf16 %v426_v45, %v425_v44  ;;  %v31_v56 = vld [vmem:[%s1409_s0 + $0x48] sm:$0xff] }
  0x1b   :  { %793 = vmatpush3.bf16.msra.mxu0 %v475_v15  ;;  %v457_v49 = vld [vmem:[%s1412_s3 + $0x190] sm:$0xff]  ;;  %v458_v50 = vld [vmem:[%s1412_s3 + $0x198] sm:$0xff]  ;;  %v472_v53 = vpack.c.bf16 %v410_v48, %v409_v46  ;;  %v42_v57 = vpack.c.bf16 %v31_v56, %v30_v55  ;;  %v34_v61 = vld [vmem:[%s1409_s0 + $0x60] sm:$0xff] }
  0x1c   :  { %857 = vmatpush3.bf16.msra.mxu1 %v491_v26  ;;  %794 = vmatprep.subr.bf16.mxu0 %v482_v27  ;;  %v496_v54 = vpack.c.bf16 %v458_v50, %v457_v49  ;;  %v32_v58 = vld [vmem:[%s1409_s0 + $0x50] sm:$0xff]  ;;  %v33_v59 = vld [vmem:[%s1409_s0 + $0x58] sm:$0xff]  ;;  %v35_v62 = vld [vmem:[%s1409_s0 + $0x68] sm:$0xff] }
  0x1d   :  { %771 = vmatmul.mubr.msk.bf16.gmra.mxu0 %vm92_vm0, %v40_v20  ;;  %858 = vmatprep.subr.bf16.mxu1 %v498_v29  ;;  %v43_v60 = vpack.c.bf16 %v33_v59, %v32_v58  ;;  %v44_v63 = vpack.c.bf16 %v35_v62, %v34_v61  ;;  %v36_v0 = vld [vmem:[%s1409_s0 + $0x70] sm:$0xff]  ;;  %v37_v1 = vld [vmem:[%s1409_s0 + $0x78] sm:$0xff]  ;;  %v423_v5 = vld [vmem:[%s1412_s3 + $0x80] sm:$0xff] }
  0x1e   :  { %779 = vmatmul.mubr.msk.bf16.gmra.mxu1 %vm92_vm0, %v40_v20  ;;  %179 = vmatprep.mubr.bf16.mxu0 %v940_v6  ;;  %v45_v2 = vpack.c.bf16 %v37_v1, %v36_v0  ;;  %v441_v3 = vld [vmem:[%s1412_s3 + $0x110] sm:$0xff]  ;;  %v424_v7 = vld [vmem:[%s1412_s3 + $0x88] sm:$0xff]  ;;  %v455_v8 = vld [vmem:[%s1412_s3 + $0x180] sm:$0xff]  ;;  %v78_v20 = vsub.s32 1, %v73_v19 }
  0x1f   :  { %292 = vmatprep.mubr.bf16.mxu1 %v940_v6  ;;  %795 = vmatpush3.bf16.msra.mxu0 %v474_v28  ;;  %v479_v9 = vpack.c.bf16 %v424_v7, %v423_v5  ;;  %v407_v10 = vld [vmem:[%s1412_s3] sm:$0xff]  ;;  %v408_v11 = vld [vmem:[%s1412_s3 + $0x8] sm:$0xff] }
  0x20   :  { %796 = vmatprep.subr.bf16.mxu0 %v481_v33  ;;  %859 = vmatpush3.bf16.msra.mxu1 %v490_v39  ;;  %v456_v12 = vld [vmem:[%s1412_s3 + $0x188] sm:$0xff]  ;;  %v471_v13 = vpack.c.bf16 %v408_v11, %v407_v10  ;;  %v439_v15 = vld [vmem:[%s1412_s3 + $0x100] sm:$0xff] }
  0x21   :  { %860 = vmatprep.subr.bf16.mxu1 %v497_v43  ;;  %v495_v14 = vpack.c.bf16 %v456_v12, %v455_v8  ;;  %v440_v16 = vld [vmem:[%s1412_s3 + $0x108] sm:$0xff]  ;;  %v70_v24 = vld [vmem:[%s1411_s2] sm:$0xf] }
  0x22   :  { %v487_v17 = vpack.c.bf16 %v440_v16, %v439_v15  ;;  %v1297_v27 = vrot.slane %v70_v24, %v78_v20  ;;  %v1299_v28 = vrot.slane %v70_v24, %v86_v21  ;;  %v1301_v29 = vrot.slane %v70_v24, %v74_v22 }
  0x23   :  { %797 = vmatpush3.bf16.msra.mxu0 %v473_v42  ;;  %v1303_v30 = vrot.slane %v70_v24, %v82_v23 }
  0x24   :  { %861 = vmatpush3.bf16.msra.mxu1 %v489_v51  ;;  %798 = vmatprep.subr.bf16.mxu0 %v480_v52 }
  0x25   :  { %772 = vmatmul.mubr.msk.bf16.gmra.mxu0 %vm92_vm0, %v41_v47  ;;  %862 = vmatprep.subr.bf16.mxu1 %v496_v54 }
  0x26   :  { %780 = vmatmul.mubr.msk.bf16.gmra.mxu1 %vm92_vm0, %v41_v47  ;;  %189 = vmatprep.mubr.bf16.mxu0 %v940_v6 }
  0x27   :  { %302 = vmatprep.mubr.bf16.mxu1 %v940_v6  ;;  %799 = vmatpush3.bf16.msra.mxu0 %v472_v53 }
  0x28   :  { %800 = vmatprep.subr.bf16.mxu0 %v479_v9 }
  0x2b   :  { %801 = vmatpush3.bf16.msra.mxu0 %v471_v13 }
  0x2d   :  { %773 = vmatmul.mubr.msk.bf16.gmra.mxu0 %vm92_vm0, %v42_v57 }
  0x2e   :  { %781 = vmatmul.mubr.msk.bf16.gmra.mxu1 %vm92_vm0, %v42_v57  ;;  %199 = vmatprep.mubr.bf16.mxu0 %v940_v6 }
  0x2f   :  { %312 = vmatprep.mubr.bf16.mxu1 %v940_v6 }
  0x35   :  { %774 = vmatmul.mubr.msk.bf16.gmra.mxu0 %vm92_vm0, %v43_v60 }
  0x36   :  { %782 = vmatmul.mubr.msk.bf16.gmra.mxu1 %vm92_vm0, %v43_v60  ;;  %209 = vmatprep.mubr.bf16.mxu0 %v940_v6 }
  0x37   :  { %322 = vmatprep.mubr.bf16.mxu1 %v940_v6 }
  0x3d   :  { %775 = vmatmul.mubr.msk.bf16.gmra.mxu0 %vm92_vm0, %v44_v63 }
  0x3e   :  { %783 = vmatmul.mubr.msk.bf16.gmra.mxu1 %vm92_vm0, %v44_v63  ;;  %219 = vmatprep.mubr.bf16.mxu0 %v940_v6 }
  0x3f   :  { %332 = vmatprep.mubr.bf16.mxu1 %v940_v6  ;;  %v442_v6 = vld [vmem:[%s1412_s3 + $0x118] sm:$0xff] }
  0x40   :  { %v488_v4 = vpack.c.bf16 %v442_v6, %v441_v3 }
  0x42   :  { %863 = vmatpush3.bf16.msra.mxu1 %v488_v4 }
  0x43   :  { %864 = vmatprep.subr.bf16.mxu1 %v495_v14 }
  0x45   :  { %776 = vmatmul.mubr.msk.bf16.gmra.mxu0 %vm92_vm0, %v45_v2 }
  0x46   :  { %784 = vmatmul.mubr.msk.bf16.gmra.mxu1 %vm92_vm0, %v45_v2 }
  0x47   :  { %865 = vmatpush3.bf16.msra.mxu1 %v487_v17 }
  0xcd   :  { %v151_v25 = vpop.f32.mrf.mxu0 }
  0xce   :  { %v264_v26 = vpop.f32.mrf.mxu1  ;;  %v152_v39 = vadd.f32 %v151_v25, %v1301_v29 }
  0xcf   :  { %v153_v31 = vpop.f32.mrf.mxu0  ;;  %v265_v40 = vadd.f32 %v264_v26, %v1303_v30 }
  0xd0   :  { %v266_v32 = vpop.f32.mrf.mxu1  ;;  %v154_v35 = vadd.f32 %v153_v31, %v1297_v27  ;;  %v343_v53 = vmax.f32 %v152_v39, 0.0 }
  0xd1   :  { %v155_v33 = vpop.f32.mrf.mxu0  ;;  %v267_v36 = vadd.f32 %v266_v32, %v1299_v28  ;;  %v345_v54 = vmax.f32 %v265_v40, 0.0 }
  0xd2   :  { %v268_v34 = vpop.f32.mrf.mxu1  ;;  %v156_v37 = vadd.f32 %v155_v33, %v1301_v29  ;;  %v344_v49 = vmax.f32 %v154_v35, 0.0 }
  0xd3   :  { %v269_v38 = vadd.f32 %v268_v34, %v1303_v30  ;;  %v157_v41 = vpop.f32.mrf.mxu0  ;;  %v346_v50 = vmax.f32 %v267_v36, 0.0 }
  0xd4   :  { %v270_v42 = vpop.f32.mrf.mxu1  ;;  %v158_v43 = vadd.f32 %v157_v41, %v1297_v27  ;;  %v347_v45 = vmax.f32 %v156_v37, 0.0 }
  0xd5   :  { %v271_v44 = vadd.f32 %v270_v42, %v1299_v28  ;;  %v349_v46 = vmax.f32 %v269_v38, 0.0  ;;  %v161_v47 = vpop.f32.mrf.mxu0 }
  0xd6   :  { %v274_v48 = vpop.f32.mrf.mxu1  ;;  %v348_v51 = vmax.f32 %v158_v43, 0.0  ;;  %v503_v59 = vpack.c.bf16 %v347_v45, %v343_v53  ;;  %v162_v3 = vadd.f32 %v161_v47, %v1301_v29 }
  0xd7   :  { %v350_v52 = vmax.f32 %v271_v44, 0.0  ;;  %v163_v55 = vpop.f32.mrf.mxu0  ;;  %v505_v60 = vpack.c.bf16 %v349_v46, %v345_v54  ;;  %v275_v6 = vadd.f32 %v274_v48, %v1303_v30 }
  0xd8   :  { %v276_v56 = vpop.f32.mrf.mxu1  ;;  %v504_v57 = vpack.c.bf16 %v348_v51, %v344_v49  ;;  %v164_v61 = vadd.f32 %v163_v55, %v1297_v27  ;;  %v351_v17 = vmax.f32 %v162_v3, 0.0 }
  0xd9   :  { %v506_v58 = vpack.c.bf16 %v350_v52, %v346_v50  ;;  %v165_v62 = vpop.f32.mrf.mxu0  ;;  %v277_v0 = vadd.f32 %v276_v56, %v1299_v28  ;;  %v353_v18 = vmax.f32 %v275_v6, 0.0 }
  0xda   :  { %v278_v63 = vpop.f32.mrf.mxu1  ;;  %v166_v1 = vadd.f32 %v165_v62, %v1301_v29  ;;  %574 = vmatprep.mubr.bf16.mxu0 %v504_v57  ;;  %v352_v13 = vmax.f32 %v164_v61, 0.0 }
  0xdb   :  { %v279_v2 = vadd.f32 %v278_v63, %v1303_v30  ;;  %671 = vmatprep.mubr.bf16.mxu1 %v506_v58  ;;  %v167_v4 = vpop.f32.mrf.mxu0  ;;  %575 = vmatmul.mubr.bf16.vlgmr.msra.gmra.mxu0 %v503_v59  ;;  %v354_v14 = vmax.f32 %v277_v0, 0.0 }
  0xdc   :  { %v280_v5 = vpop.f32.mrf.mxu1  ;;  %672 = vmatmul.mubr.bf16.vlgmr.msra.gmra.mxu1 %v505_v60  ;;  %v168_v7 = vadd.f32 %v167_v4, %v1297_v27  ;;  %v355_v9 = vmax.f32 %v166_v1, 0.0 }
  0xdd   :  { %v281_v8 = vadd.f32 %v280_v5, %v1299_v28  ;;  %v357_v10 = vmax.f32 %v279_v2, 0.0  ;;  %v171_v11 = vpop.f32.mrf.mxu0 }
  0xde   :  { %v284_v12 = vpop.f32.mrf.mxu1  ;;  %v356_v15 = vmax.f32 %v168_v7, 0.0  ;;  %v507_v23 = vpack.c.bf16 %v355_v9, %v351_v17  ;;  %v172_v35 = vadd.f32 %v171_v11, %v1301_v29 }
  0xdf   :  { %v358_v16 = vmax.f32 %v281_v8, 0.0  ;;  %v173_v19 = vpop.f32.mrf.mxu0  ;;  %v509_v24 = vpack.c.bf16 %v357_v10, %v353_v18  ;;  %v285_v36 = vadd.f32 %v284_v12, %v1303_v30 }
  0xe0   :  { %v286_v20 = vpop.f32.mrf.mxu1  ;;  %v508_v21 = vpack.c.bf16 %v356_v15, %v352_v13  ;;  %v174_v25 = vadd.f32 %v173_v19, %v1297_v27  ;;  %v359_v49 = vmax.f32 %v172_v35, 0.0 }
  0xe1   :  { %v510_v22 = vpack.c.bf16 %v358_v16, %v354_v14  ;;  %v175_v26 = vpop.f32.mrf.mxu0  ;;  %v287_v32 = vadd.f32 %v286_v20, %v1299_v28  ;;  %v361_v50 = vmax.f32 %v285_v36, 0.0 }
  0xe2   :  { %v288_v31 = vpop.f32.mrf.mxu1  ;;  %v176_v33 = vadd.f32 %v175_v26, %v1301_v29  ;;  %582 = vmatprep.mubr.bf16.mxu0 %v508_v21  ;;  %v360_v45 = vmax.f32 %v174_v25, 0.0 }
  0xe3   :  { %v289_v34 = vadd.f32 %v288_v31, %v1303_v30  ;;  %679 = vmatprep.mubr.bf16.mxu1 %v510_v22  ;;  %v177_v37 = vpop.f32.mrf.mxu0  ;;  %583 = vmatmul.mubr.bf16.gmra.mxu0 %v507_v23  ;;  %v362_v46 = vmax.f32 %v287_v32, 0.0 }
  0xe4   :  { %v290_v38 = vpop.f32.mrf.mxu1  ;;  %680 = vmatmul.mubr.bf16.gmra.mxu1 %v509_v24  ;;  %v178_v39 = vadd.f32 %v177_v37, %v1297_v27  ;;  %v363_v41 = vmax.f32 %v176_v33, 0.0 }
  0xe5   :  { %v291_v40 = vadd.f32 %v290_v38, %v1299_v28  ;;  %v365_v42 = vmax.f32 %v289_v34, 0.0  ;;  %v181_v43 = vpop.f32.mrf.mxu0 }
  0xe6   :  { %v294_v44 = vpop.f32.mrf.mxu1  ;;  %v364_v47 = vmax.f32 %v178_v39, 0.0  ;;  %v511_v55 = vpack.c.bf16 %v363_v41, %v359_v49  ;;  %v182_v63 = vadd.f32 %v181_v43, %v1301_v29 }
  0xe7   :  { %v366_v48 = vmax.f32 %v291_v40, 0.0  ;;  %v183_v51 = vpop.f32.mrf.mxu0  ;;  %v513_v56 = vpack.c.bf16 %v365_v42, %v361_v50  ;;  %v295_v0 = vadd.f32 %v294_v44, %v1303_v30 }
  0xe8   :  { %v296_v52 = vpop.f32.mrf.mxu1  ;;  %v512_v53 = vpack.c.bf16 %v364_v47, %v360_v45  ;;  %v184_v57 = vadd.f32 %v183_v51, %v1297_v27  ;;  %v367_v13 = vmax.f32 %v182_v63, 0.0 }
  0xe9   :  { %v514_v54 = vpack.c.bf16 %v366_v48, %v362_v46  ;;  %v185_v58 = vpop.f32.mrf.mxu0  ;;  %v297_v60 = vadd.f32 %v296_v52, %v1299_v28  ;;  %v369_v14 = vmax.f32 %v295_v0, 0.0 }
  0xea   :  { %v298_v59 = vpop.f32.mrf.mxu1  ;;  %v186_v61 = vadd.f32 %v185_v58, %v1301_v29  ;;  %590 = vmatprep.mubr.bf16.mxu0 %v512_v53  ;;  %v368_v9 = vmax.f32 %v184_v57, 0.0 }
  0xeb   :  { %v299_v62 = vadd.f32 %v298_v59, %v1303_v30  ;;  %687 = vmatprep.mubr.bf16.mxu1 %v514_v54  ;;  %v187_v1 = vpop.f32.mrf.mxu0  ;;  %591 = vmatmul.mubr.bf16.gmra.mxu0 %v511_v55  ;;  %v370_v10 = vmax.f32 %v297_v60, 0.0 }
  0xec   :  { %v300_v2 = vpop.f32.mrf.mxu1  ;;  %688 = vmatmul.mubr.bf16.gmra.mxu1 %v513_v56  ;;  %v188_v3 = vadd.f32 %v187_v1, %v1297_v27  ;;  %v371_v4 = vmax.f32 %v186_v61, 0.0 }
  0xed   :  { %v301_v6 = vadd.f32 %v300_v2, %v1299_v28  ;;  %v373_v5 = vmax.f32 %v299_v62, 0.0  ;;  %v191_v7 = vpop.f32.mrf.mxu0 }
  0xee   :  { %v304_v8 = vpop.f32.mrf.mxu1  ;;  %v372_v11 = vmax.f32 %v188_v3, 0.0  ;;  %v515_v19 = vpack.c.bf16 %v371_v4, %v367_v13  ;;  %v192_v31 = vadd.f32 %v191_v7, %v1301_v29 }
  0xef   :  { %v374_v12 = vmax.f32 %v301_v6, 0.0  ;;  %v193_v15 = vpop.f32.mrf.mxu0  ;;  %v517_v20 = vpack.c.bf16 %v373_v5, %v369_v14  ;;  %v305_v32 = vadd.f32 %v304_v8, %v1303_v30 }
  0xf0   :  { %v306_v16 = vpop.f32.mrf.mxu1  ;;  %v516_v17 = vpack.c.bf16 %v372_v11, %v368_v9  ;;  %v194_v21 = vadd.f32 %v193_v15, %v1297_v27  ;;  %v375_v45 = vmax.f32 %v192_v31, 0.0 }
  0xf1   :  { %v518_v18 = vpack.c.bf16 %v374_v12, %v370_v10  ;;  %v195_v22 = vpop.f32.mrf.mxu0  ;;  %v307_v24 = vadd.f32 %v306_v16, %v1299_v28  ;;  %v377_v46 = vmax.f32 %v305_v32, 0.0 }
  0xf2   :  { %v308_v23 = vpop.f32.mrf.mxu1  ;;  %v196_v25 = vadd.f32 %v195_v22, %v1301_v29  ;;  %598 = vmatprep.mubr.bf16.mxu0 %v516_v17  ;;  %v376_v41 = vmax.f32 %v194_v21, 0.0 }
  0xf3   :  { %v309_v26 = vadd.f32 %v308_v23, %v1303_v30  ;;  %695 = vmatprep.mubr.bf16.mxu1 %v518_v18  ;;  %v197_v33 = vpop.f32.mrf.mxu0  ;;  %599 = vmatmul.mubr.bf16.gmra.mxu0 %v515_v19  ;;  %v378_v42 = vmax.f32 %v307_v24, 0.0 }
  0xf4   :  { %v310_v34 = vpop.f32.mrf.mxu1  ;;  %696 = vmatmul.mubr.bf16.gmra.mxu1 %v517_v20  ;;  %v198_v35 = vadd.f32 %v197_v33, %v1297_v27  ;;  %v379_v37 = vmax.f32 %v196_v25, 0.0 }
  0xf5   :  { %v311_v36 = vadd.f32 %v310_v34, %v1299_v28  ;;  %v381_v38 = vmax.f32 %v309_v26, 0.0  ;;  %v201_v39 = vpop.f32.mrf.mxu0 }
  0xf6   :  { %v314_v40 = vpop.f32.mrf.mxu1  ;;  %v380_v43 = vmax.f32 %v198_v35, 0.0  ;;  %v519_v51 = vpack.c.bf16 %v379_v37, %v375_v45  ;;  %v202_v59 = vadd.f32 %v201_v39, %v1301_v29 }
  0xf7   :  { %v382_v44 = vmax.f32 %v311_v36, 0.0  ;;  %v203_v47 = vpop.f32.mrf.mxu0  ;;  %v521_v52 = vpack.c.bf16 %v381_v38, %v377_v46  ;;  %v315_v60 = vadd.f32 %v314_v40, %v1303_v30 }
  0xf8   :  { %v316_v48 = vpop.f32.mrf.mxu1  ;;  %v520_v49 = vpack.c.bf16 %v380_v43, %v376_v41  ;;  %v204_v53 = vadd.f32 %v203_v47, %v1297_v27  ;;  %v383_v9 = vmax.f32 %v202_v59, 0.0 }
  0xf9   :  { %v522_v50 = vpack.c.bf16 %v382_v44, %v378_v42  ;;  %v205_v54 = vpop.f32.mrf.mxu0  ;;  %v317_v56 = vadd.f32 %v316_v48, %v1299_v28  ;;  %v385_v10 = vmax.f32 %v315_v60, 0.0 }
  0xfa   :  { %v318_v55 = vpop.f32.mrf.mxu1  ;;  %v206_v57 = vadd.f32 %v205_v54, %v1301_v29  ;;  %606 = vmatprep.mubr.bf16.mxu0 %v520_v49  ;;  %v384_v4 = vmax.f32 %v204_v53, 0.0 }
  0xfb   :  { %v319_v58 = vadd.f32 %v318_v55, %v1303_v30  ;;  %703 = vmatprep.mubr.bf16.mxu1 %v522_v50  ;;  %v207_v61 = vpop.f32.mrf.mxu0  ;;  %607 = vmatmul.mubr.bf16.gmra.mxu0 %v519_v51  ;;  %v386_v5 = vmax.f32 %v317_v56, 0.0 }
  0xfc   :  { %v320_v62 = vpop.f32.mrf.mxu1  ;;  %704 = vmatmul.mubr.bf16.gmra.mxu1 %v521_v52  ;;  %v208_v63 = vadd.f32 %v207_v61, %v1297_v27  ;;  %v387_v1 = vmax.f32 %v206_v57, 0.0 }
  0xfd   :  { %v321_v0 = vadd.f32 %v320_v62, %v1299_v28  ;;  %v389_v2 = vmax.f32 %v319_v58, 0.0  ;;  %v211_v3 = vpop.f32.mrf.mxu0 }
  0xfe   :  { %v324_v6 = vpop.f32.mrf.mxu1  ;;  %v388_v7 = vmax.f32 %v208_v63, 0.0  ;;  %v523_v15 = vpack.c.bf16 %v387_v1, %v383_v9  ;;  %v212_v23 = vadd.f32 %v211_v3, %v1301_v29 }
  0xff   :  { %v390_v8 = vmax.f32 %v321_v0, 0.0  ;;  %v213_v11 = vpop.f32.mrf.mxu0  ;;  %v525_v16 = vpack.c.bf16 %v389_v2, %v385_v10  ;;  %v325_v24 = vadd.f32 %v324_v6, %v1303_v30 }
 0x100   :  { %v326_v12 = vpop.f32.mrf.mxu1  ;;  %v524_v13 = vpack.c.bf16 %v388_v7, %v384_v4  ;;  %v214_v17 = vadd.f32 %v213_v11, %v1297_v27  ;;  %v391_v41 = vmax.f32 %v212_v23, 0.0 }
 0x101   :  { %v526_v14 = vpack.c.bf16 %v390_v8, %v386_v5  ;;  %v215_v18 = vpop.f32.mrf.mxu0  ;;  %v327_v20 = vadd.f32 %v326_v12, %v1299_v28  ;;  %v393_v42 = vmax.f32 %v325_v24, 0.0 }
 0x102   :  { %v328_v19 = vpop.f32.mrf.mxu1  ;;  %v216_v21 = vadd.f32 %v215_v18, %v1301_v29  ;;  %614 = vmatprep.mubr.bf16.mxu0 %v524_v13  ;;  %v392_v37 = vmax.f32 %v214_v17, 0.0 }
 0x103   :  { %v329_v22 = vadd.f32 %v328_v19, %v1303_v30  ;;  %711 = vmatprep.mubr.bf16.mxu1 %v526_v14  ;;  %v217_v25 = vpop.f32.mrf.mxu0  ;;  %615 = vmatmul.mubr.bf16.gmra.mxu0 %v523_v15  ;;  %v394_v38 = vmax.f32 %v327_v20, 0.0 }
 0x104   :  { %v330_v26 = vpop.f32.mrf.mxu1  ;;  %712 = vmatmul.mubr.bf16.gmra.mxu1 %v525_v16  ;;  %v218_v31 = vadd.f32 %v217_v25, %v1297_v27  ;;  %v395_v33 = vmax.f32 %v216_v21, 0.0 }
 0x105   :  { %v331_v32 = vadd.f32 %v330_v26, %v1299_v28  ;;  %v397_v34 = vmax.f32 %v329_v22, 0.0  ;;  %v221_v35 = vpop.f32.mrf.mxu0 }
 0x106   :  { %v334_v36 = vpop.f32.mrf.mxu1  ;;  %v396_v39 = vmax.f32 %v218_v31, 0.0  ;;  %v527_v47 = vpack.c.bf16 %v395_v33, %v391_v41  ;;  %v222_v55 = vadd.f32 %v221_v35, %v1301_v29 }
 0x107   :  { %v398_v40 = vmax.f32 %v331_v32, 0.0  ;;  %v223_v43 = vpop.f32.mrf.mxu0  ;;  %v529_v48 = vpack.c.bf16 %v397_v34, %v393_v42  ;;  %v335_v56 = vadd.f32 %v334_v36, %v1303_v30 }
 0x108   :  { %v336_v44 = vpop.f32.mrf.mxu1  ;;  %v528_v45 = vpack.c.bf16 %v396_v39, %v392_v37  ;;  %v224_v49 = vadd.f32 %v223_v43, %v1297_v27  ;;  %v399_v3 = vmax.f32 %v222_v55, 0.0 }
 0x109   :  { %v530_v46 = vpack.c.bf16 %v398_v40, %v394_v38  ;;  %v225_v50 = vpop.f32.mrf.mxu0  ;;  %v337_v52 = vadd.f32 %v336_v44, %v1299_v28  ;;  %v401_v6 = vmax.f32 %v335_v56, 0.0 }
 0x10a   :  { %v338_v51 = vpop.f32.mrf.mxu1  ;;  %v226_v53 = vadd.f32 %v225_v50, %v1301_v29  ;;  %622 = vmatprep.mubr.bf16.mxu0 %v528_v45  ;;  %v400_v63 = vmax.f32 %v224_v49, 0.0 }
 0x10b   :  { %v339_v54 = vadd.f32 %v338_v51, %v1303_v30  ;;  %719 = vmatprep.mubr.bf16.mxu1 %v530_v46  ;;  %v227_v57 = vpop.f32.mrf.mxu0  ;;  %623 = vmatmul.mubr.bf16.gmra.mxu0 %v527_v47  ;;  %v402_v0 = vmax.f32 %v337_v52, 0.0 }
 0x10c   :  { %v340_v58 = vpop.f32.mrf.mxu1  ;;  %720 = vmatmul.mubr.bf16.gmra.mxu1 %v529_v48  ;;  %v228_v59 = vadd.f32 %v227_v57, %v1297_v27  ;;  %v403_v61 = vmax.f32 %v226_v53, 0.0 }
 0x10d   :  { %v341_v60 = vadd.f32 %v340_v58, %v1299_v28  ;;  %v405_v62 = vmax.f32 %v339_v54, 0.0  ;;  %v1372_v28 = vld [vmem:[%s1413_s4] ss:$0 sm:$0xff] }
 0x10e   :  { %v404_v1 = vmax.f32 %v228_v59, 0.0  ;;  %v531_v5 = vpack.c.bf16 %v403_v61, %v399_v3 }
 0x10f   :  { %v406_v2 = vmax.f32 %v341_v60, 0.0  ;;  %v533_v30 = vpack.c.bf16 %v405_v62, %v401_v6 }
 0x110   :  { %v532_v4 = vpack.c.bf16 %v404_v1, %v400_v63 }
 0x111   :  { %v534_v29 = vpack.c.bf16 %v406_v2, %v402_v0 }
 0x112   :  { %630 = vmatprep.mubr.bf16.mxu0 %v532_v4 }
 0x113   :  { %727 = vmatprep.mubr.bf16.mxu1 %v534_v29  ;;  %631 = vmatmul.mubr.bf16.gmra.mxu0 %v531_v5 }
 0x114   :  { %728 = vmatmul.mubr.bf16.gmra.mxu1 %v533_v30 }
 0x19b   :  { %v802_v7 = vpop.f32.mrf.mxu0 }
 0x19c   :  { %v866_v27 = vpop.f32.mrf.mxu1 }
 0x19d   :  { %v803_v8 = vpop.f32.mrf.mxu0 }
 0x19e   :  { %v867_v9 = vpop.f32.mrf.mxu1  ;;  %v804_v10 = vadd.f32 %v803_v8, %v802_v7 }
 0x19f   :  { %v805_v11 = vpop.f32.mrf.mxu0  ;;  %v868_v14 = vadd.f32 %v867_v9, %v866_v27 }
 0x1a0   :  { %v869_v12 = vpop.f32.mrf.mxu1  ;;  %v577_v13 = vadd.f32 %v804_v10, %v1372_v28 }
 0x1a1   :  { %v806_v15 = vpop.f32.mrf.mxu0 }
 0x1a2   :  { %v870_v16 = vpop.f32.mrf.mxu1  ;;  %v674_v17 = vadd.f32 %v868_v14, %v577_v13  ;;  %v807_v18 = vadd.f32 %v806_v15, %v805_v11 }
 0x1a3   :  { %v808_v19 = vpop.f32.mrf.mxu0  ;;  %v871_v22 = vadd.f32 %v870_v16, %v869_v12 }
 0x1a4   :  { %v872_v20 = vpop.f32.mrf.mxu1  ;;  %737 = vst.msk [vmem:[#allocation2] sm:$0xff] %vm736_vm1, %v674_v17  ;;  %v580_v21 = vadd.f32 %v807_v18, %v1372_v28 }
 0x1a5   :  { %v809_v23 = vpop.f32.mrf.mxu0 }
 0x1a6   :  { %v873_v24 = vpop.f32.mrf.mxu1  ;;  %v677_v25 = vadd.f32 %v871_v22, %v580_v21  ;;  %v810_v26 = vadd.f32 %v809_v23, %v808_v19 }
 0x1a7   :  { %v811_v31 = vpop.f32.mrf.mxu0  ;;  %v874_v34 = vadd.f32 %v873_v24, %v872_v20 }
 0x1a8   :  { %v875_v32 = vpop.f32.mrf.mxu1  ;;  %738 = vst.msk [vmem:[#allocation2 + $0x8] sm:$0xff] %vm736_vm1, %v677_v25  ;;  %v585_v33 = vadd.f32 %v810_v26, %v1372_v28 }
 0x1a9   :  { %v812_v35 = vpop.f32.mrf.mxu0 }
 0x1aa   :  { %v876_v36 = vpop.f32.mrf.mxu1  ;;  %v682_v37 = vadd.f32 %v874_v34, %v585_v33  ;;  %v813_v38 = vadd.f32 %v812_v35, %v811_v31 }
 0x1ab   :  { %v814_v39 = vpop.f32.mrf.mxu0  ;;  %v877_v42 = vadd.f32 %v876_v36, %v875_v32 }
 0x1ac   :  { %v878_v40 = vpop.f32.mrf.mxu1  ;;  %739 = vst.msk [vmem:[#allocation2 + $0x10] sm:$0xff] %vm736_vm1, %v682_v37  ;;  %v588_v41 = vadd.f32 %v813_v38, %v1372_v28 }
 0x1ad   :  { %v815_v43 = vpop.f32.mrf.mxu0 }
 0x1ae   :  { %v879_v44 = vpop.f32.mrf.mxu1  ;;  %v685_v45 = vadd.f32 %v877_v42, %v588_v41  ;;  %v816_v46 = vadd.f32 %v815_v43, %v814_v39 }
 0x1af   :  { %v817_v47 = vpop.f32.mrf.mxu0  ;;  %v880_v50 = vadd.f32 %v879_v44, %v878_v40 }
 0x1b0   :  { %v881_v48 = vpop.f32.mrf.mxu1  ;;  %740 = vst.msk [vmem:[#allocation2 + $0x18] sm:$0xff] %vm736_vm1, %v685_v45  ;;  %v593_v49 = vadd.f32 %v816_v46, %v1372_v28 }
 0x1b1   :  { %v818_v51 = vpop.f32.mrf.mxu0 }
 0x1b2   :  { %v882_v52 = vpop.f32.mrf.mxu1  ;;  %v690_v53 = vadd.f32 %v880_v50, %v593_v49  ;;  %v819_v54 = vadd.f32 %v818_v51, %v817_v47 }
 0x1b3   :  { %v820_v55 = vpop.f32.mrf.mxu0  ;;  %v883_v58 = vadd.f32 %v882_v52, %v881_v48 }
 0x1b4   :  { %v884_v56 = vpop.f32.mrf.mxu1  ;;  %741 = vst.msk [vmem:[#allocation2 + $0x20] sm:$0xff] %vm736_vm1, %v690_v53  ;;  %v596_v57 = vadd.f32 %v819_v54, %v1372_v28 }
 0x1b5   :  { %v821_v59 = vpop.f32.mrf.mxu0 }
 0x1b6   :  { %v885_v60 = vpop.f32.mrf.mxu1  ;;  %v693_v61 = vadd.f32 %v883_v58, %v596_v57  ;;  %v822_v62 = vadd.f32 %v821_v59, %v820_v55 }
 0x1b7   :  { %v823_v63 = vpop.f32.mrf.mxu0  ;;  %v886_v2 = vadd.f32 %v885_v60, %v884_v56 }
 0x1b8   :  { %v887_v0 = vpop.f32.mrf.mxu1  ;;  %742 = vst.msk [vmem:[#allocation2 + $0x28] sm:$0xff] %vm736_vm1, %v693_v61  ;;  %v601_v1 = vadd.f32 %v822_v62, %v1372_v28 }
 0x1b9   :  { %v824_v3 = vpop.f32.mrf.mxu0 }
 0x1ba   :  { %v888_v6 = vpop.f32.mrf.mxu1  ;;  %v698_v4 = vadd.f32 %v886_v2, %v601_v1  ;;  %v825_v29 = vadd.f32 %v824_v3, %v823_v63 }
 0x1bb   :  { %v826_v5 = vpop.f32.mrf.mxu0  ;;  %v889_v27 = vadd.f32 %v888_v6, %v887_v0 }
 0x1bc   :  { %v890_v30 = vpop.f32.mrf.mxu1  ;;  %743 = vst.msk [vmem:[#allocation2 + $0x30] sm:$0xff] %vm736_vm1, %v698_v4  ;;  %v604_v7 = vadd.f32 %v825_v29, %v1372_v28 }
 0x1bd   :  { %v827_v8 = vpop.f32.mrf.mxu0 }
 0x1be   :  { %v891_v9 = vpop.f32.mrf.mxu1  ;;  %v701_v10 = vadd.f32 %v889_v27, %v604_v7  ;;  %v828_v11 = vadd.f32 %v827_v8, %v826_v5 }
 0x1bf   :  { %v829_v12 = vpop.f32.mrf.mxu0  ;;  %v892_v15 = vadd.f32 %v891_v9, %v890_v30 }
 0x1c0   :  { %v893_v13 = vpop.f32.mrf.mxu1  ;;  %744 = vst.msk [vmem:[#allocation2 + $0x38] sm:$0xff] %vm736_vm1, %v701_v10  ;;  %v609_v14 = vadd.f32 %v828_v11, %v1372_v28 }
 0x1c1   :  { %v830_v16 = vpop.f32.mrf.mxu0 }
 0x1c2   :  { %v894_v17 = vpop.f32.mrf.mxu1  ;;  %v706_v18 = vadd.f32 %v892_v15, %v609_v14  ;;  %v831_v19 = vadd.f32 %v830_v16, %v829_v12 }
 0x1c3   :  { %v832_v20 = vpop.f32.mrf.mxu0  ;;  %v895_v23 = vadd.f32 %v894_v17, %v893_v13 }
 0x1c4   :  { %v896_v21 = vpop.f32.mrf.mxu1  ;;  %745 = vst.msk [vmem:[#allocation2 + $0x40] sm:$0xff] %vm736_vm1, %v706_v18  ;;  %v612_v22 = vadd.f32 %v831_v19, %v1372_v28 }
 0x1c5   :  { %v833_v24 = vpop.f32.mrf.mxu0 }
 0x1c6   :  { %v897_v25 = vpop.f32.mrf.mxu1  ;;  %v709_v26 = vadd.f32 %v895_v23, %v612_v22  ;;  %v834_v31 = vadd.f32 %v833_v24, %v832_v20 }
 0x1c7   :  { %v835_v32 = vpop.f32.mrf.mxu0  ;;  %v898_v35 = vadd.f32 %v897_v25, %v896_v21 }
 0x1c8   :  { %v899_v33 = vpop.f32.mrf.mxu1  ;;  %746 = vst.msk [vmem:[#allocation2 + $0x48] sm:$0xff] %vm736_vm1, %v709_v26  ;;  %v617_v34 = vadd.f32 %v834_v31, %v1372_v28 }
 0x1c9   :  { %v836_v36 = vpop.f32.mrf.mxu0 }
 0x1ca   :  { %v900_v37 = vpop.f32.mrf.mxu1  ;;  %v714_v38 = vadd.f32 %v898_v35, %v617_v34  ;;  %v837_v39 = vadd.f32 %v836_v36, %v835_v32 }
 0x1cb   :  { %v838_v40 = vpop.f32.mrf.mxu0  ;;  %v901_v43 = vadd.f32 %v900_v37, %v899_v33 }
 0x1cc   :  { %v902_v41 = vpop.f32.mrf.mxu1  ;;  %747 = vst.msk [vmem:[#allocation2 + $0x50] sm:$0xff] %vm736_vm1, %v714_v38  ;;  %v620_v42 = vadd.f32 %v837_v39, %v1372_v28 }
 0x1cd   :  { %v839_v44 = vpop.f32.mrf.mxu0 }
 0x1ce   :  { %v903_v45 = vpop.f32.mrf.mxu1  ;;  %v717_v46 = vadd.f32 %v901_v43, %v620_v42  ;;  %v840_v47 = vadd.f32 %v839_v44, %v838_v40 }
 0x1cf   :  { %v841_v48 = vpop.f32.mrf.mxu0  ;;  %v904_v51 = vadd.f32 %v903_v45, %v902_v41 }
 0x1d0   :  { %v905_v49 = vpop.f32.mrf.mxu1  ;;  %748 = vst.msk [vmem:[#allocation2 + $0x58] sm:$0xff] %vm736_vm1, %v717_v46  ;;  %v625_v50 = vadd.f32 %v840_v47, %v1372_v28 }
 0x1d1   :  { %v842_v52 = vpop.f32.mrf.mxu0 }
 0x1d2   :  { %v906_v53 = vpop.f32.mrf.mxu1  ;;  %v722_v54 = vadd.f32 %v904_v51, %v625_v50  ;;  %v843_v55 = vadd.f32 %v842_v52, %v841_v48 }
 0x1d3   :  { %v844_v56 = vpop.f32.mrf.mxu0  ;;  %v907_v59 = vadd.f32 %v906_v53, %v905_v49 }
 0x1d4   :  { %v908_v57 = vpop.f32.mrf.mxu1  ;;  %749 = vst.msk [vmem:[#allocation2 + $0x60] sm:$0xff] %vm736_vm1, %v722_v54  ;;  %v628_v58 = vadd.f32 %v843_v55, %v1372_v28 }
 0x1d5   :  { %v845_v60 = vpop.f32.mrf.mxu0 }
 0x1d6   :  { %v909_v61 = vpop.f32.mrf.mxu1  ;;  %v725_v62 = vadd.f32 %v907_v59, %v628_v58  ;;  %v846_v63 = vadd.f32 %v845_v60, %v844_v56 }
 0x1d7   :  { %v847_v0 = vpop.f32.mrf.mxu0  ;;  %v910_v3 = vadd.f32 %v909_v61, %v908_v57 }
 0x1d8   :  { %v911_v1 = vpop.f32.mrf.mxu1  ;;  %750 = vst.msk [vmem:[#allocation2 + $0x68] sm:$0xff] %vm736_vm1, %v725_v62  ;;  %v633_v2 = vadd.f32 %v846_v63, %v1372_v28 }
 0x1d9   :  { %v848_v6 = vpop.f32.mrf.mxu0 }
 0x1da   :  { %v912_v4 = vpop.f32.mrf.mxu1  ;;  %v730_v29 = vadd.f32 %v910_v3, %v633_v2  ;;  %v849_v5 = vadd.f32 %v848_v6, %v847_v0 }
 0x1db   :  { %v913_v7 = vadd.f32 %v912_v4, %v911_v1 }
 0x1dc   :  { %751 = vst.msk [vmem:[#allocation2 + $0x70] sm:$0xff] %vm736_vm1, %v730_v29  ;;  %v636_v30 = vadd.f32 %v849_v5, %v1372_v28 }
 0x1de   :  { %v733_v27 = vadd.f32 %v913_v7, %v636_v30 }
 0x1e0   :  { %752 = vst.msk [vmem:[#allocation2 + $0x78] sm:$0xff] %vm736_vm1, %v733_v27 }
 0x1e1   :  { %757 = vsyncadd [#allocation3], 1920  ;;  %s941_s4 = smov [#allocation2]  }
 0x1e2   :  { %s758_s30 = sshll.u32 %s941_s4, 4  ;;  %s759_s30 = int_to_ptr.vmem [resolvable:$true] %s758_s30 }
 0x1e3   :  { %s918_s1 = scalar_lea.vmem %s759_s30, 128  ;;  %s922_s6 = scalar_lea.vmem %s759_s30, 2048 }
 0x1e4   :  { %p919_p0 = scmp.ne.s32.totalorder %s759_s30, %s918_s1  ;;  %p923_p1 = scmp.lt.s32.totalorder %s759_s30, %s759_s30 }
 0x1e5   :  { %p924_p2 = scmp.lt.s32.totalorder %s922_s6, %s918_s1 }
 0x1e7   :  { %p925_p3 = por %p924_p2, %p923_p1 }
 0x1e9   :  { %p926_p4 = pnand %p925_p3, %p919_p0 }
 0x1eb   :  { %929 = shalt.err (!%p926_p4)
}
 0x1ec   :  { %s942_s7 = smov 128   ;;  %s943_s8 = smov 8  }
 0x1ed   :  { %764 = dma.vmem_to_hbm [thread:$0]  %s759_s30, 128, %s1414_s5, [#allocation3], %s942_s7, %s942_s7, %s943_s8  }
 0x1ee   :  { %938 = dma.done.wait [#allocation3], 2048  }
 0x1ef   :  { %939 = vsyncadd [#allocation3], 4294965248 }
 0x1f0   :  { %768 = vsyncpa [#allocation3], 1 }

</bundles_post_ra>
